<compile_context>
chip_gen: v6e
topology: v6e:2x2x1
jax: 0.10.0
libtpu: 0.0.40
codegen_flags: <defaults>
</compile_context>

<pallas_src>
import functools

import jax
import jax.numpy as jnp
import numpy as np
from jax.experimental import pallas as pl
from jax.experimental.pallas import tpu as pltpu


def _round_up(n, m):
    return ((n + m - 1) // m) * m


def _vmem_limit_bytes(default=48 * 1024 * 1024):
    """Per-generation scoped-VMEM limit (~84% of physical: v5e/v6e ~108MiB, v7x ~54MiB)."""
    try:
        cap = getattr(pltpu.get_tpu_info(), "vmem_capacity_bytes", None)
        if not cap:
            return default
        return int(cap) * 27 // 32
    except Exception:
        return default


def _conv_taps(w_ref, b_ref, o_ref, win_ref, acc_ref, *, kernel_size, dilation,
               halo_b, tm):
    """K MXU matmuls over the [halo | tile] bf16 window; f32 accumulation."""
    c_pad = o_ref.shape[-1]
    acc_ref[...] = jnp.broadcast_to(b_ref[...], (tm, c_pad))
    for k in range(kernel_size):
        shift = (kernel_size - 1 - k) * dilation
        xs = win_ref[pl.ds(halo_b - shift, tm), :]
        acc_ref[...] += jnp.dot(xs, w_ref[k], preferred_element_type=jnp.float32)
    o_ref[0] = acc_ref[...].astype(o_ref.dtype)


def _kernel_refetch(x_ref, halo_ref, w_ref, b_ref, o_ref, win_ref, acc_ref, *,
                    kernel_size, dilation, halo_b, tm):
    j = pl.program_id(1)  # time-tile index

    @pl.when(j == 0)
    def _():  # causal left padding
        win_ref[0:halo_b, :] = jnp.zeros((halo_b, win_ref.shape[1]), win_ref.dtype)

    @pl.when(j > 0)
    def _():  # tail of previous tile, refetched from HBM via the halo BlockSpec
        win_ref[0:halo_b, :] = halo_ref[0].astype(win_ref.dtype)

    win_ref[halo_b:, :] = x_ref[0].astype(win_ref.dtype)
    _conv_taps(w_ref, b_ref, o_ref, win_ref, acc_ref, kernel_size=kernel_size,
               dilation=dilation, halo_b=halo_b, tm=tm)


def _kernel_carry(x_ref, w_ref, b_ref, o_ref, win_ref, acc_ref, carry_ref, *,
                  kernel_size, dilation, halo_b, tm):
    j = pl.program_id(1)  # time-tile index (sequential / "arbitrary" axis)

    @pl.when(j == 0)
    def _():  # causal left padding (also resets the carry for every batch row)
        win_ref[0:halo_b, :] = jnp.zeros((halo_b, win_ref.shape[1]), win_ref.dtype)

    @pl.when(j > 0)
    def _():  # tail of previous tile, carried in VMEM (no HBM refetch)
        win_ref[0:halo_b, :] = carry_ref[...]

    win_ref[halo_b:, :] = x_ref[0].astype(win_ref.dtype)
    _conv_taps(w_ref, b_ref, o_ref, win_ref, acc_ref, kernel_size=kernel_size,
               dilation=dilation, halo_b=halo_b, tm=tm)
    carry_ref[...] = win_ref[tm:tm + halo_b, :]


def causal_dilated_conv(x, w, b, *, dilation, tm_target=None, carry_halo=None,
                        out_dtype=None):
    """Causal dilated 1-D convolution (PyTorch CausalDilatedConv semantics).

    x: (B, T, C) tokens-major input (any float dtype; pass bf16 to minimize HBM I/O).
    w: (K, C_in, C_out) taps, i.e. w[k, ci, co] = torch_conv.weight[co, ci, k].
    b: (C_out,) bias.
    Returns (B, T, C_out) in `out_dtype` (default: x.dtype).
    """
    B, T, C = x.shape
    K, c_in, c_out = w.shape
    assert c_in == C and c_out == C, "module uses square channels (n_embd -> n_embd)"

    out_dtype = jnp.dtype(x.dtype if out_dtype is None else out_dtype)
    in_bpe = jnp.dtype(x.dtype).itemsize
    out_bpe = out_dtype.itemsize

    halo = (K - 1) * dilation                    # causal receptive-field history
    halo_b = max(8, _round_up(max(halo, 1), 8))  # sublane-aligned halo block
    c_pad = max(128, _round_up(C, 128))          # lane-dense matmuls / stores

    vmem_limit = _vmem_limit_bytes()

    # Constant-index weight/bias blocks: single-buffer once they are big enough
    # to matter for VMEM (critical for v7x's 64 MiB at large C); harmless waste
    # otherwise, so keep the default pipeline for small weights.
    w_db_bytes = 2 * K * c_pad * c_pad * 2
    single_buffer_w = w_db_bytes > 4 * 1024 * 1024
    w_buffers = 1 if single_buffer_w else 2

    # Time-tile size from the VMEM budget (bigger tiles amortize the ~0.35 us
    # per-grid-step overhead; mem-bound kernels need >=512-row tiles to approach
    # the HBM roofline).  Capped at 1024; scales down automatically with c_pad.
    if tm_target is None:
        budget = vmem_limit // 2
        fixed = (w_buffers * K * c_pad * c_pad * 2          # resident bf16 taps
                 + 2 * c_pad * 4                             # bias
                 + 2 * halo_b * c_pad * in_bpe)              # halo double-buffer
        per_row = c_pad * (2 * in_bpe + 2 * out_bpe + 2 + 4)  # x/out dbuf + bf16 win + f32 acc
        tm_target = max(halo_b, (budget - fixed) // per_row)
        tm_target = min(int(tm_target), 1024)

    tm = int(max(halo_b, min(int(tm_target), _round_up(T, halo_b))))
    tm = _round_up(tm, halo_b)       # refetch halo index_map needs tm % halo_b == 0
    n_t = pl.cdiv(T, tm)             # ragged tail handled by masked partial blocks

    if carry_halo is None:
        # Refetching the halo costs halo_b extra HBM rows per tile; carry it in
        # VMEM (serial time axis) once that is a sizable fraction of the tile.
        carry_halo = (n_t > 1) and (halo_b * 8 >= tm)

    # Wrapper-side materialization is limited to the tiny parameters and, only
    # when C % 128 != 0, a single fused channel pad of the activations.
    x_in = x if c_pad == C else jnp.pad(x, ((0, 0), (0, 0), (0, c_pad - C)))
    w_p = jnp.pad(w, ((0, 0), (0, c_pad - C), (0, c_pad - C))).astype(jnp.bfloat16)
    b_p = jnp.pad(b, (0, c_pad - C)).reshape(1, c_pad).astype(jnp.float32)

    r = tm // halo_b  # halo-blocks per time tile

    w_spec_kwargs = {"pipeline_mode": pl.Buffered(1)} if single_buffer_w else {}
    w_spec = pl.BlockSpec((K, c_pad, c_pad), lambda bi, ji: (0, 0, 0), **w_spec_kwargs)
    b_spec = pl.BlockSpec((1, c_pad), lambda bi, ji: (0, 0), **w_spec_kwargs)
    x_spec = pl.BlockSpec((1, tm, c_pad), lambda bi, ji: (bi, ji, 0))
    o_spec = pl.BlockSpec((1, tm, c_pad), lambda bi, ji: (bi, ji, 0))

    common_scratch = [pltpu.VMEM((halo_b + tm, c_pad), jnp.bfloat16),  # window
                      pltpu.VMEM((tm, c_pad), jnp.float32)]            # accumulator

    if carry_halo:
        kernel = functools.partial(_kernel_carry, kernel_size=K, dilation=dilation,
                                   halo_b=halo_b, tm=tm)
        in_specs = [x_spec, w_spec, b_spec]
        operands = (x_in, w_p, b_p)
        scratch = common_scratch + [pltpu.VMEM((halo_b, c_pad), jnp.bfloat16)]
        semantics = ("parallel", "arbitrary")
        halo_read = 0
    else:
        kernel = functools.partial(_kernel_refetch, kernel_size=K, dilation=dilation,
                                   halo_b=halo_b, tm=tm)
        halo_spec = pl.BlockSpec(
            (1, halo_b, c_pad),
            lambda bi, ji: (bi, jnp.maximum(ji * r - 1, 0), 0))
        in_specs = [x_spec, halo_spec, w_spec, b_spec]
        operands = (x_in, x_in, w_p, b_p)
        scratch = common_scratch
        semantics = ("parallel", "parallel")
        halo_read = halo_b

    flops = 2 * B * n_t * tm * c_pad * c_pad * K
    bytes_accessed = (B * n_t * (tm + halo_read) * c_pad * in_bpe   # activation reads
                      + K * c_pad * c_pad * 2 + c_pad * 4           # resident params
                      + B * n_t * tm * c_pad * out_bpe)             # activation writes

    out_p = pl.pallas_call(
        kernel,
        out_shape=jax.ShapeDtypeStruct((B, T, c_pad), out_dtype),
        grid_spec=pltpu.PrefetchScalarGridSpec(
            num_scalar_prefetch=0,
            grid=(B, n_t),
            in_specs=in_specs,
            out_specs=o_spec,
            scratch_shapes=scratch,
        ),
        compiler_params=pltpu.CompilerParams(
            dimension_semantics=semantics,
            vmem_limit_bytes=int(vmem_limit)),
        cost_estimate=pl.CostEstimate(
            flops=int(flops), transcendentals=0, bytes_accessed=int(bytes_accessed)),
    )(*operands)

    # Only slice when channels were actually padded; in a real model keep the
    # padded channel layout across layers to avoid this pass entirely.
    return out_p if c_pad == C else out_p[..., :C]


def _init_params(key, n_embd, kernel_size):
    """nn.Conv1d-style init: uniform(+-1/sqrt(C_in*K)) for weight and bias."""
    k1, k2 = jax.random.split(key)
    lim = 1.0 / np.sqrt(n_embd * kernel_size)
    # Stored as (K, C_in, C_out) == torch weight (C_out, C_in, K) transposed.
    w = jax.random.uniform(k1, (kernel_size, n_embd, n_embd), jnp.float32, -lim, lim)
    b = jax.random.uniform(k2, (n_embd,), jnp.float32, -lim, lim)
    return w, b


def _reference(x, w, b, dilation):
    """Pure-JAX reference: left-pad (K-1)*d zeros, dilated conv, f32 math."""
    B, T, _ = x.shape
    K, _, c_out = w.shape
    x = x.astype(jnp.float32)
    out = jnp.zeros((B, T, c_out), jnp.float32) + b
    for k in range(K):
        s = (K - 1 - k) * dilation
        xs = jnp.pad(x, ((0, 0), (s, 0), (0, 0)))[:, :T, :]
        out = out + jnp.einsum("btc,co->bto", xs, w[k],
                               preferred_element_type=jnp.float32)
    return out


if __name__ == "__main__":
    key = jax.random.PRNGKey(0)

    cases = [
        # module-default small shape, single tile
        dict(B=2, T=8, C=32, K=3, d=2, xdt=jnp.float32, tol=3e-2, kw={}),
        # ragged multi-tile (T % tm != 0), halo-refetch path
        dict(B=2, T=40, C=32, K=3, d=2, xdt=jnp.float32, tol=3e-2,
             kw=dict(tm_target=16, carry_halo=False)),
        # larger dilation, carried-halo path (sequential time axis)
        dict(B=2, T=128, C=32, K=3, d=8, xdt=jnp.float32, tol=3e-2,
             kw=dict(tm_target=32, carry_halo=True)),
        # bf16 activation I/O path (halved HBM traffic), relaxed tolerance
        dict(B=2, T=64, C=32, K=3, d=2, xdt=jnp.bfloat16, tol=6e-2,
             kw=dict(tm_target=32, out_dtype=jnp.bfloat16)),
    ]

    for i, cfg in enumerate(cases):
        kx, kp = jax.random.split(jax.random.fold_in(key, i))
        x = jax.random.normal(kx, (cfg["B"], cfg["T"], cfg["C"]), jnp.float32)
        w, b = _init_params(kp, cfg["C"], cfg["K"])
        x_in = x.astype(cfg["xdt"])

        out = causal_dilated_conv(x_in, w, b, dilation=cfg["d"], **cfg["kw"])
        out = jax.block_until_ready(out)

        ref = _reference(x_in, w, b, cfg["d"])
        # bf16 MXU operands (f32 accumulation) vs f32 reference -> relaxed tolerance.
        np.testing.assert_allclose(
            np.asarray(jnp.asarray(out, jnp.float32)), np.asarray(ref),
            rtol=cfg["tol"], atol=cfg["tol"],
            err_msg=f"case {i} failed: {cfg}")

    print("KERNEL_OK")
</pallas_src>

<mosaic_0001>
module attributes {stable_mosaic.version = 11 : i64} {
  func.func @_kernel_refetch(%arg0: i32, %arg1: i32, %arg2: memref<1x8x128xf32, #tpu.memory_space<vmem>>, %arg3: memref<1x8x128xf32, #tpu.memory_space<vmem>>, %arg4: memref<3x128x128xbf16, #tpu.memory_space<vmem>>, %arg5: memref<1x128xf32, #tpu.memory_space<vmem>>, %arg6: memref<1x8x128xf32, #tpu.memory_space<vmem>>, %arg7: memref<16x128xbf16, #tpu.memory_space<vmem>>, %arg8: memref<8x128xf32, #tpu.memory_space<vmem>>) attributes {dimension_semantics = [#tpu.dimension_semantics<parallel>, #tpu.dimension_semantics<parallel>], iteration_bounds = array<i64: 2, 1>, scalar_prefetch = 0 : i64, scratch_operands = 2 : i64, tpu.core_type = #tpu.core_type<tc>, window_params = [{transform_indices = @transform_0, window_bounds = array<i64: 1, 8, 128>}, {transform_indices = @transform_1, window_bounds = array<i64: 1, 8, 128>}, {pipeline_mode = #tpu.pipeline_mode<synchronous>, transform_indices = @transform_2, window_bounds = array<i64: 3, 128, 128>}, {pipeline_mode = #tpu.pipeline_mode<synchronous>, transform_indices = @transform_3, window_bounds = array<i64: 1, 128>}, {transform_indices = @transform_4, window_bounds = array<i64: 1, 8, 128>}]} {
    %c0_i32 = arith.constant 0 : i32
    %0 = arith.cmpi eq, %arg1, %c0_i32 : i32
    %1 = arith.extui %0 : i1 to i32
    %c0_i32_0 = arith.constant 0 : i32
    %2 = arith.cmpi ne, %1, %c0_i32_0 : i32
    scf.if %2 {
      %cst_40 = arith.constant 0.000000e+00 : bf16
      %39 = vector.broadcast %cst_40 : bf16 to vector<8x128xbf16>
      %c0_41 = arith.constant 0 : index
      %c0_42 = arith.constant 0 : index
      %40 = vector.load %arg7[%c0_41, %c0_42] : memref<16x128xbf16, #tpu.memory_space<vmem>>, vector<8x128xbf16>
      tpu.vector_store %arg7[%c0_41, %c0_42], %39 {strides = array<i32>} : memref<16x128xbf16, #tpu.memory_space<vmem>>, vector<8x128xbf16>,
    } else {
    }
    %c0_i32_1 = arith.constant 0 : i32
    %3 = arith.cmpi sgt, %arg1, %c0_i32_1 : i32
    %4 = arith.extui %3 : i1 to i32
    %c0_i32_2 = arith.constant 0 : i32
    %5 = arith.cmpi ne, %4, %c0_i32_2 : i32
    scf.if %5 {
      %c0_40 = arith.constant 0 : index
      %c0_41 = arith.constant 0 : index
      %c0_42 = arith.constant 0 : index
      %39 = vector.load %arg3[%c0_40, %c0_41, %c0_42] : memref<1x8x128xf32, #tpu.memory_space<vmem>>, vector<1x8x128xf32>
      %40 = vector.shape_cast %39 : vector<1x8x128xf32> to vector<8x128xf32>
      %41 = arith.truncf %40 : vector<8x128xf32> to vector<8x128xbf16>
      %c0_43 = arith.constant 0 : index
      %c0_44 = arith.constant 0 : index
      %42 = vector.load %arg7[%c0_43, %c0_44] : memref<16x128xbf16, #tpu.memory_space<vmem>>, vector<8x128xbf16>
      tpu.vector_store %arg7[%c0_43, %c0_44], %41 {strides = array<i32>} : memref<16x128xbf16, #tpu.memory_space<vmem>>, vector<8x128xbf16>,
    } else {
    }
    %c0 = arith.constant 0 : index
    %c0_3 = arith.constant 0 : index
    %c0_4 = arith.constant 0 : index
    %6 = vector.load %arg2[%c0, %c0_3, %c0_4] : memref<1x8x128xf32, #tpu.memory_space<vmem>>, vector<1x8x128xf32>
    %7 = vector.shape_cast %6 : vector<1x8x128xf32> to vector<8x128xf32>
    %8 = arith.truncf %7 : vector<8x128xf32> to vector<8x128xbf16>
    %c8 = arith.constant 8 : index
    %c0_5 = arith.constant 0 : index
    %9 = vector.load %arg7[%c8, %c0_5] : memref<16x128xbf16, #tpu.memory_space<vmem>>, vector<8x128xbf16>
    tpu.vector_store %arg7[%c8, %c0_5], %8 {strides = array<i32>} : memref<16x128xbf16, #tpu.memory_space<vmem>>, vector<8x128xbf16>,
    %c0_6 = arith.constant 0 : index
    %c0_7 = arith.constant 0 : index
    %10 = vector.load %arg5[%c0_6, %c0_7] : memref<1x128xf32, #tpu.memory_space<vmem>>, vector<1x128xf32>
    %11 = vector.shape_cast %10 : vector<1x128xf32> to vector<1x128xf32>
    %12 = vector.broadcast %11 : vector<1x128xf32> to vector<8x128xf32>
    %c0_8 = arith.constant 0 : index
    %c0_9 = arith.constant 0 : index
    %13 = vector.load %arg8[%c0_8, %c0_9] : memref<8x128xf32, #tpu.memory_space<vmem>>, vector<8x128xf32>
    tpu.vector_store %arg8[%c0_8, %c0_9], %12 {strides = array<i32>} : memref<8x128xf32, #tpu.memory_space<vmem>>, vector<8x128xf32>,
    %c4 = arith.constant 4 : index
    %c0_10 = arith.constant 0 : index
    %14 = vector.load %arg7[%c4, %c0_10] : memref<16x128xbf16, #tpu.memory_space<vmem>>, vector<8x128xbf16>
    %c0_11 = arith.constant 0 : index
    %c0_12 = arith.constant 0 : index
    %15 = vector.load %arg8[%c0_11, %c0_12] : memref<8x128xf32, #tpu.memory_space<vmem>>, vector<8x128xf32>
    %c0_13 = arith.constant 0 : index
    %c0_14 = arith.constant 0 : index
    %c0_15 = arith.constant 0 : index
    %16 = vector.load %arg4[%c0_13, %c0_14, %c0_15] : memref<3x128x128xbf16, #tpu.memory_space<vmem>>, vector<1x128x128xbf16>
    %17 = vector.shape_cast %16 : vector<1x128x128xbf16> to vector<128x128xbf16>
    %cst = arith.constant dense<0.000000e+00> : vector<8x128xf32>
    %18 = tpu.matmul %14, %17, %cst {dimension_numbers = #tpu.dot_dimension_numbers<[1], [0], [0], [1], [0, 0, 1, 1], [], []>} : vector<8x128xbf16>, vector<128x128xbf16>, vector<8x128xf32> -> vector<8x128xf32>
    %19 = arith.addf %15, %18 : vector<8x128xf32>
    %c0_16 = arith.constant 0 : index
    %c0_17 = arith.constant 0 : index
    %20 = vector.load %arg8[%c0_16, %c0_17] : memref<8x128xf32, #tpu.memory_space<vmem>>, vector<8x128xf32>
    tpu.vector_store %arg8[%c0_16, %c0_17], %19 {strides = array<i32>} : memref<8x128xf32, #tpu.memory_space<vmem>>, vector<8x128xf32>,
    %c6 = arith.constant 6 : index
    %c0_18 = arith.constant 0 : index
    %21 = vector.load %arg7[%c6, %c0_18] : memref<16x128xbf16, #tpu.memory_space<vmem>>, vector<8x128xbf16>
    %c0_19 = arith.constant 0 : index
    %c0_20 = arith.constant 0 : index
    %22 = vector.load %arg8[%c0_19, %c0_20] : memref<8x128xf32, #tpu.memory_space<vmem>>, vector<8x128xf32>
    %c1 = arith.constant 1 : index
    %c0_21 = arith.constant 0 : index
    %c0_22 = arith.constant 0 : index
    %23 = vector.load %arg4[%c1, %c0_21, %c0_22] : memref<3x128x128xbf16, #tpu.memory_space<vmem>>, vector<1x128x128xbf16>
    %24 = vector.shape_cast %23 : vector<1x128x128xbf16> to vector<128x128xbf16>
    %cst_23 = arith.constant dense<0.000000e+00> : vector<8x128xf32>
    %25 = tpu.matmul %21, %24, %cst_23 {dimension_numbers = #tpu.dot_dimension_numbers<[1], [0], [0], [1], [0, 0, 1, 1], [], []>} : vector<8x128xbf16>, vector<128x128xbf16>, vector<8x128xf32> -> vector<8x128xf32>
    %26 = arith.addf %22, %25 : vector<8x128xf32>
    %c0_24 = arith.constant 0 : index
    %c0_25 = arith.constant 0 : index
    %27 = vector.load %arg8[%c0_24, %c0_25] : memref<8x128xf32, #tpu.memory_space<vmem>>, vector<8x128xf32>
    tpu.vector_store %arg8[%c0_24, %c0_25], %26 {strides = array<i32>} : memref<8x128xf32, #tpu.memory_space<vmem>>, vector<8x128xf32>,
    %c8_26 = arith.constant 8 : index
    %c0_27 = arith.constant 0 : index
    %28 = vector.load %arg7[%c8_26, %c0_27] : memref<16x128xbf16, #tpu.memory_space<vmem>>, vector<8x128xbf16>
    %c0_28 = arith.constant 0 : index
    %c0_29 = arith.constant 0 : index
    %29 = vector.load %arg8[%c0_28, %c0_29] : memref<8x128xf32, #tpu.memory_space<vmem>>, vector<8x128xf32>
    %c2 = arith.constant 2 : index
    %c0_30 = arith.constant 0 : index
    %c0_31 = arith.constant 0 : index
    %30 = vector.load %arg4[%c2, %c0_30, %c0_31] : memref<3x128x128xbf16, #tpu.memory_space<vmem>>, vector<1x128x128xbf16>
    %31 = vector.shape_cast %30 : vector<1x128x128xbf16> to vector<128x128xbf16>
    %cst_32 = arith.constant dense<0.000000e+00> : vector<8x128xf32>
    %32 = tpu.matmul %28, %31, %cst_32 {dimension_numbers = #tpu.dot_dimension_numbers<[1], [0], [0], [1], [0, 0, 1, 1], [], []>} : vector<8x128xbf16>, vector<128x128xbf16>, vector<8x128xf32> -> vector<8x128xf32>
    %33 = arith.addf %29, %32 : vector<8x128xf32>
    %c0_33 = arith.constant 0 : index
    %c0_34 = arith.constant 0 : index
    %34 = vector.load %arg8[%c0_33, %c0_34] : memref<8x128xf32, #tpu.memory_space<vmem>>, vector<8x128xf32>
    tpu.vector_store %arg8[%c0_33, %c0_34], %33 {strides = array<i32>} : memref<8x128xf32, #tpu.memory_space<vmem>>, vector<8x128xf32>,
    %c0_35 = arith.constant 0 : index
    %c0_36 = arith.constant 0 : index
    %35 = vector.load %arg8[%c0_35, %c0_36] : memref<8x128xf32, #tpu.memory_space<vmem>>, vector<8x128xf32>
    %c0_37 = arith.constant 0 : index
    %c0_38 = arith.constant 0 : index
    %c0_39 = arith.constant 0 : index
    %36 = vector.load %arg6[%c0_37, %c0_38, %c0_39] : memref<1x8x128xf32, #tpu.memory_space<vmem>>, vector<1x8x128xf32>
    %37 = vector.shape_cast %36 : vector<1x8x128xf32> to vector<8x128xf32>
    %38 = vector.shape_cast %35 : vector<8x128xf32> to vector<1x8x128xf32>
    tpu.vector_store %arg6[%c0_37, %c0_38, %c0_39], %38 {strides = array<i32>} : memref<1x8x128xf32, #tpu.memory_space<vmem>>, vector<1x8x128xf32>,
    return
  }
  func.func @transform_0(%arg0: i32, %arg1: i32) -> (i32, i32, i32) {
    %c0_i32 = arith.constant 0 : i32
    %c0_i32_0 = arith.constant 0 : i32
    return %arg0, %arg1, %c0_i32 : i32, i32, i32
  }
  func.func @transform_1(%arg0: i32, %arg1: i32) -> (i32, i32, i32) {
    %c1_i32 = arith.constant 1 : i32
    %0 = arith.muli %arg1, %c1_i32 : i32
    %c1_i32_0 = arith.constant 1 : i32
    %1 = arith.subi %0, %c1_i32_0 : i32
    %c0_i32 = arith.constant 0 : i32
    %2 = arith.maxsi %1, %c0_i32 : i32
    %c0_i32_1 = arith.constant 0 : i32
    %c0_i32_2 = arith.constant 0 : i32
    return %arg0, %2, %c0_i32_1 : i32, i32, i32
  }
  func.func @transform_2(%arg0: i32, %arg1: i32) -> (i32, i32, i32) {
    %c0_i32 = arith.constant 0 : i32
    %c0_i32_0 = arith.constant 0 : i32
    %c0_i32_1 = arith.constant 0 : i32
    %c0_i32_2 = arith.constant 0 : i32
    return %c0_i32, %c0_i32_0, %c0_i32_1 : i32, i32, i32
  }
  func.func @transform_3(%arg0: i32, %arg1: i32) -> (i32, i32) {
    %c0_i32 = arith.constant 0 : i32
    %c0_i32_0 = arith.constant 0 : i32
    %c0_i32_1 = arith.constant 0 : i32
    return %c0_i32, %c0_i32_0 : i32, i32
  }
  func.func @transform_4(%arg0: i32, %arg1: i32) -> (i32, i32, i32) {
    %c0_i32 = arith.constant 0 : i32
    %c0_i32_0 = arith.constant 0 : i32
    return %arg0, %arg1, %c0_i32 : i32, i32, i32
  }
}

</mosaic_0001>

<bundles_post_ra>
// kernel: tpu_custom_call.1
= control target key start
LH: loop header
LB: loop body
LE: loop exit
PB: predicated region body
PF: predicated region fallthrough
CT: control target
= control target key end

     0   :  { %s1474_s0 = inlined_call_operand.hbm [shape: f32[2,8,128], index: 0, kind: input, shape index: {}]   ;;  %s1475_s1 = inlined_call_operand.hbm [shape: f32[2,8,128], index: 1, kind: input, shape index: {}]   ;;  %s1476_s2 = inlined_call_operand.hbm [shape: bf16[3,128,128], index: 2, kind: input, shape index: {}]   ;;  %s1477_s3 = inlined_call_operand.vmem [shape: f32[1,128], index: 3, kind: input, shape index: {}]   ;;  %s1478_s4 = inlined_call_operand.hbm [shape: f32[2,8,128], index: 4, kind: output, shape index: {}]  }
   0x1   :  { %1480 = sst [smem:[#allocation16_spill]] %s1476_s2 }
   0x2   :  { %9 = vsyncpa [#allocation5], 0 }
   0x3   :  { %11 = vsyncpa [#allocation5 + $0x1], 0 }
   0x4   :  { %12 = vsyncpa [#allocation8], 0 }
   0x5   :  { %14 = vsyncpa [#allocation8 + $0x1], 0 }
   0x6   :  { %15 = vsyncpa [#allocation6], 0 }
   0x7   :  { %17 = vsyncpa [#allocation6 + $0x1], 0  ;;  %s1239_s15 = smov 0   ;;  %s1241_s16 = smov 0  }
   0x8   :  { %s1243_s17 = smov 0   ;;  %s1245_s18 = smov 0  }
   0x9   :  { %s1247_s19 = smov 0   ;;  %s1249_s20 = smov 0  }
   0xa LB: > { %s1270_s21 = sadd.s32 4294967295, %s1203_s20   ;;  %s793_s22 = sadd.s32 4294967294, %s1203_s20   ;;  %s1203_s20 = sphi %s1249_s20, %s23_s20   ;;  %s1199_s19 = sphi %s1247_s19, %s1498_s19   ;;  %s1195_s18 = sphi %s1245_s18, %s1497_s18   ;;  %s1191_s17 = sphi %s1243_s17, %s1496_s17   ;;  %s1187_s16 = sphi %s1241_s16, %s1495_s16   ;;  %s1183_s15 = sphi %s1239_s15, %s1494_s15  }
   0xb   : > { %p57_p0 = scmp.ne.s32.totalorder %s1187_s16, %s1183_s15  ;;  %p58_p1 = scmp.eq.s32.totalorder %s1270_s21, 0 }
   0xc   : > { %p165_p3 = scmp.eq.s32.totalorder %s793_s22, 1  ;;  %p794_p5 = scmp.ge.s32.totalorder %s1203_s20, 1 }
   0xd   : > { %p1279_p4 = por %p58_p1, %p57_p0  ;;  %p172_p7 = scmp.lt.s32.totalorder %s1203_s20, 3 }
   0xe   : > { %p1284_p6 = por %p165_p3, %p57_p0  ;;  %s1205_s26 = smov [#allocation9]  }
   0xf   : > { %p1289_p8 = pnand %p794_p5, %p172_p7  ;;  %s184_s27 = sshll.u32 %s1205_s26, 4  ;;  %s185_s27 = int_to_ptr.vmem [resolvable:$true] %s184_s27 }
  0x10   : > { %s1482_s24 = scalar_select %p1284_p6, 1, 0 }
  0x11   : > { %p934_p9 = pneg %p1289_p8  ;;  %s35_s29 = sadd.s32 1, %s1199_s19 }
  0x12   : > { %s1044_s30 = scalar_lea.vmem %s185_s27, 3072  ;;  %p1052_p5 = scmp.lt.s32.totalorder %s185_s27, %s185_s27 }
  0x13   : > { %p1298_p11 = pnand %p934_p9, %p58_p1  ;;  %p1045_p13 = scmp.ne.s32.totalorder %s185_s27, %s1044_s30 }
  0x14   : > { %p1053_p7 = scmp.lt.s32.totalorder %s1044_s30, %s1044_s30 }
  0x15   : > { %p1035_p12 = pneg %p1298_p11 }
  0x16   : > { %p1054_p2 = por %p1053_p7, %p1052_p5 }
  0x17   : > { %p1047_p0 = pnand %p1045_p13, %p1035_p12 }
  0x19   : > { %p1048_p3 = pneg %p1047_p0 }
  0x1b   : > { %p1055_p6 = pnand %p1054_p2, %p1048_p3 }
  0x1d   : > { %1058 = shalt.err (!%p1055_p6)
}
  0x1e   : > { %s1206_s5 = smov 64   ;;  %s1207_s6 = smov 4  }
  0x1f   : > { %s1485_s2 = sld [smem:[#allocation16_spill]]  ;;  %p37_p2 = scmp.ge.s32.totalorder %s35_s29, 2 }
  0x20   : > { %s44_s9 = sadd.s32 1, %s1191_s17  ;;  %p51_p6 = scmp.ne.s32.totalorder %s1191_s17, %s1187_s16 }
  0x21   : > { %p52_p9 = scmp.eq.s32.totalorder %s1203_s20, 0  ;;  %s1500_s29 = smov (%p37_p2, %s35_s29), 0 }
  0x22   : > { %1486 = sst [smem:[#allocation15_spill]] %s1500_s29  ;;  %p1488_p13 = scmp.eq.s32.totalorder %s1270_s21, 1 }
  0x23   : > { %p1316_p12 = por %p52_p9, %p51_p6  ;;  %s39_s12 = ssub.s32 %s1199_s19, %s1500_s29 }
  0x24   : > { %p1322_p0 = por %p1488_p13, %p51_p6  ;;  %p42_p3 = scmp.eq.s32.totalorder %s39_s12, 0 }
  0x25   : > { %937 = dma.hbm_to_vmem [thread:$0]  (!%p1298_p11), %s1485_s2, 3072, %s185_s27, [#allocation8], %s1206_s5, %s1206_s5, %s1207_s6  }
  0x26   : > { %p950_p11 = scmp.lt.s32.totalorder %s1203_s20, 2  ;;  %s201_s13 = sand.u32 1, %s1191_s17  }
  0x27   : > { %s797_s14 = sshll.u32 %s201_s13, 3  ;;  %s798_s26 = sshll.u32 %s1199_s19, 7 }
  0x28   : > { %s1331_s22 = scalar_select %p42_p3, %s1191_s17, %s44_s9  }
  0x29   : > { %s211_s30 = scalar_lea.hbm %s1474_s0, %s798_s26  ;;  %s205_s5 = scalar_lea.vmem [#allocation4], %s797_s14 }
  0x2a   : > { %s213_s6 = sshll.u32 %s205_s5, 4  ;;  %p1339_p5 = pnand %p950_p11, %p1316_p12  ;;  %s214_s6 = int_to_ptr.vmem [resolvable:$true] %s213_s6 }
  0x2b   : > { %s1346_s9 = scalar_lea.hbm %s1475_s1, %s798_s26  ;;  %s220_s12 = sand.u32 1, %s1203_s20  }
  0x2c   : > { %s202_s29 = scalar_lea.sflag [#allocation5], %s201_s13  ;;  %p1061_p7 = pneg %p1339_p5 }
  0x2d   : > { %s1072_s27 = scalar_lea.vmem %s214_s6, 128  ;;  %s1208_s10 = smov [#allocation4]  }
  0x2e   : > { %p1073_p2 = scmp.ne.s32.totalorder %s214_s6, %s1072_s27  ;;  %s1077_s28 = sshll.u32 %s1208_s10, 4  ;;  %s1078_s28 = int_to_ptr.vmem [resolvable:$false] %s1077_s28 }
  0x2f   : > { %s1079_s5 = scalar_lea.vmem %s1078_s28, 256  ;;  %p1080_p12 = scmp.lt.s32.totalorder %s214_s6, %s1078_s28 }
  0x30   : > { %p1075_p6 = pnand %p1073_p2, %p1061_p7  ;;  %p1081_p13 = scmp.lt.s32.totalorder %s1079_s5, %s1072_s27 }
  0x32   : > { %p1076_p9 = pneg %p1075_p6  ;;  %p1082_p11 = por %p1081_p13, %p1080_p12 }
  0x34   : > { %p1083_p3 = pnand %p1082_p11, %p1076_p9 }
  0x36   : > { %1086 = shalt.err (!%p1083_p3)
}
  0x37   : > { %941 = dma.hbm_to_vmem [thread:$0]  (!%p1339_p5), %s211_s30, 128, %s214_s6, %s202_s29  }
  0x38   : > { %s224_s2 = scalar_lea.vmem [#allocation7], %s797_s14  ;;  %s221_s26 = scalar_lea.sflag [#allocation8], %s220_s12 }
  0x39   : > { %s235_s13 = sshll.u32 %s224_s2, 4  ;;  %s1209_s10 = smov [#allocation7]   ;;  %s236_s13 = int_to_ptr.vmem [resolvable:$true] %s235_s13 }
  0x3a   : > { %s1100_s8 = scalar_lea.vmem %s236_s13, 128  ;;  %s1105_s28 = sshll.u32 %s1209_s10, 4  ;;  %s1106_s28 = int_to_ptr.vmem [resolvable:$false] %s1105_s28 }
  0x3b   : > { %p1101_p2 = scmp.ne.s32.totalorder %s236_s13, %s1100_s8  ;;  %s1107_s27 = scalar_lea.vmem %s1106_s28, 256 }
  0x3c   : > { %p1108_p9 = scmp.lt.s32.totalorder %s236_s13, %s1106_s28  ;;  %p1109_p12 = scmp.lt.s32.totalorder %s1107_s27, %s1100_s8 }
  0x3d   : > { %p1103_p6 = pnand %p1101_p2, %p1061_p7 }
  0x3e   : > { %p1110_p13 = por %p1109_p12, %p1108_p9 }
  0x3f   : > { %p1104_p10 = pneg %p1103_p6 }
  0x41   : > { %p1111_p11 = pnand %p1110_p13, %p1104_p10 }
  0x43   : > { %1114 = shalt.err (!%p1111_p11)
}
  0x44   : > { %944 = dma.hbm_to_vmem [thread:$0]  (!%p1339_p5), %s1346_s9, 128, %s236_s13, %s221_s26  }
  0x45   : > { %244 = sbr.rel (%p1289_p8) target bundleno = 355 (0x163), region = 36  ;;  %s1365_s29 = sand.u32 (!%p1289_p8), 1, %s1187_s16  }
  0x46   : > { %s802_s14 = sshll.u32 (!%p1289_p8), %s1365_s29, 3  ;;  %s247_s30 = scalar_lea.sflag (!%p1289_p8), [#allocation5], %s1365_s29 }
  0x47   : > { %s1371_s6 = scalar_lea.vmem (!%p1289_p8), [#allocation4], %s802_s14 }
  0x4a   : > { %1166 = dma.done.wait (%p1279_p4), %s247_s30, 128  }
  0x4b   : > { %1168 = vsyncadd (%p1279_p4), %s247_s30, 4294967168  ;;  %s255_s25 = sand.u32 1, %s1270_s21  }
  0x4c   : > { %s256_s7 = scalar_lea.sflag [#allocation8], %s255_s25 }
  0x4d   : > { %1170 = dma.done.wait (%p1279_p4), %s256_s7, 128  }
  0x4e   : > { %1172 = vsyncadd (%p1279_p4), %s256_s7, 4294967168 }
  0x4f   : > { %1174 = dma.done.wait (%p58_p1), [#allocation8], 3072  }
  0x50   : > { %1176 = vsyncadd (%p58_p1), [#allocation8], 4294964224  ;;  %v1210_v0 = vmov 0.0   ;;  %v1211_v1 = vmov 0   ;;  %vm1212_vm0 = vmmov 0   ;;  %v1007_v2 = vld [vmem:[#allocation9 + $0x38] sm:$0xff]  }
  0x51   : > { %864 = vmatprep.subr.bf16.mxu0 %v1210_v0  ;;  %884 = vmatprep.subr.bf16.mxu1 %v1210_v0  ;;  %301 = vst [vmem:[#allocation2] sm:$0xf] %v1211_v1  ;;  %v1008_v3 = vld [vmem:[#allocation9 + $0x78] sm:$0xff]   ;;  %v1009_v4 = vld [vmem:[#allocation9 + $0x30] sm:$0xff]   ;;  %v1011_v6 = vld [vmem:[#allocation9 + $0x28] sm:$0xff]   ;;  %s834_s9 = sshll.u32 %s1195_s18, 7 }
  0x52   : > { %880 = vmatprep.mubr.msk.bf16.mxu0 %vm1212_vm0, %v1210_v0  ;;  %900 = vmatprep.mubr.msk.bf16.mxu1 %vm1212_vm0, %v1210_v0  ;;  %v1010_v5 = vld [vmem:[#allocation9 + $0x70] sm:$0xff]   ;;  %v1012_v7 = vld [vmem:[#allocation9 + $0x68] sm:$0xff]   ;;  %v1013_v8 = vld [vmem:[#allocation9 + $0x20] sm:$0xff]   ;;  %s292_s12 = scalar_lea.vmem [#allocation10], %s802_s14  ;;  %s1426_s26 = scalar_lea.hbm %s1478_s4, %s834_s9 }
  0x53   : > { %865 = vmatpush3.bf16.msra.mxu0 %v1007_v2  ;;  %885 = vmatpush3.bf16.msra.mxu1 %v1008_v3  ;;  %v1014_v9 = vld [vmem:[#allocation9 + $0x60] sm:$0xff]   ;;  %v1015_v10 = vld [vmem:[#allocation9 + $0x18] sm:$0xff]   ;;  %v1017_v14 = vld [vmem:[#allocation9 + $0x10] sm:$0xff]   ;;  %s679_s5 = sshll.u32 %s292_s12, 4  ;;  %s665_s18 = scalar_lea.sflag [#allocation6], %s1365_s29  ;;  %s1428_s5 = int_to_ptr.vmem [resolvable:$true] %s679_s5 }
  0x54   : > { %866 = vmatprep.subr.bf16.mxu0 %v1210_v0  ;;  %886 = vmatprep.subr.bf16.mxu1 %v1210_v0  ;;  %v1016_v11 = vld [vmem:[#allocation9 + $0x58] sm:$0xff]   ;;  %v309_v12 = vld [vmem:[%s1371_s6] sm:$0xff]  ;;  %v1018_v15 = vld [vmem:[#allocation9 + $0x50] sm:$0xff]   ;;  %s1115_s8 = scalar_lea.vmem %s1428_s5, 128  ;;  %s1213_s10 = smov [#allocation10]  }
  0x55   : > { %v310_v13 = vpack.c.bf16 %v309_v12, %v309_v12  ;;  %v1019_v16 = vld [vmem:[#allocation9 + $0x8] sm:$0xff]   ;;  %v1021_v19 = vld [vmem:[#allocation9] sm:$0xff]   ;;  %v1024_v23 = vld [vmem:[#allocation9 + $0xb8] sm:$0xff]   ;;  %p1116_p1 = scmp.ne.s32.totalorder %s1428_s5, %s1115_s8  ;;  %s1119_s28 = sshll.u32 %s1213_s10, 4  ;;  %s1120_s28 = int_to_ptr.vmem [resolvable:$false] %s1119_s28 }
  0x56   : > { %v1020_v17 = vld [vmem:[#allocation9 + $0x48] sm:$0xff]   ;;  %v1023_v21 = vld [vmem:[#allocation9 + $0x40] sm:$0xff]   ;;  %v1026_v25 = vld [vmem:[#allocation9 + $0xb0] sm:$0xff]   ;;  %s1121_s27 = scalar_lea.vmem %s1120_s28, 256  ;;  %p1122_p10 = scmp.lt.s32.totalorder %s1428_s5, %s1120_s28 }
  0x57   : > { %867 = vmatpush3.bf16.msra.mxu0 %v1009_v4  ;;  %887 = vmatpush3.bf16.msra.mxu1 %v1010_v5  ;;  %311 = vst [vmem:[#allocation2 + $0x4] sm:$0xf] %v310_v13  ;;  %v1027_v26 = vld [vmem:[#allocation9 + $0xa8] sm:$0xff]   ;;  %v1028_v27 = vld [vmem:[#allocation9 + $0xa0] sm:$0xff]   ;;  %v1029_v28 = vld [vmem:[#allocation9 + $0x98] sm:$0xff]   ;;  %p1117_p4 = pnand %p1116_p1, %p1322_p0  ;;  %p1123_p5 = scmp.lt.s32.totalorder %s1121_s27, %s1115_s8 }
  0x58   : > { %868 = vmatprep.subr.bf16.mxu0 %v1210_v0  ;;  %888 = vmatprep.subr.bf16.mxu1 %v1210_v0  ;;  %v1030_v29 = vld [vmem:[#allocation9 + $0x90] sm:$0xff]   ;;  %v1031_v30 = vld [vmem:[#allocation9 + $0x88] sm:$0xff]   ;;  %v1032_v31 = vld [vmem:[#allocation9 + $0x80] sm:$0xff]  }
  0x59   : > { %v806_v41 = vld [vmem:[%s1477_s3] ss:$0 sm:$0xff]  ;;  %p1118_p8 = pneg %p1117_p4  ;;  %p1124_p7 = por %p1123_p5, %p1122_p10 }
  0x5b   : > { %869 = vmatpush3.bf16.msra.mxu0 %v1011_v6  ;;  %889 = vmatpush3.bf16.msra.mxu1 %v1012_v7  ;;  %p1125_p3 = pnand %p1124_p7, %p1118_p8 }
  0x5c   : > { %870 = vmatprep.subr.bf16.mxu0 %v1210_v0  ;;  %890 = vmatprep.subr.bf16.mxu1 %v1210_v0 }
  0x5e   : > { %v1022_v18 = vld [vmem:[#allocation2] sm:$0x3c]  }
  0x5f   : > { %871 = vmatpush3.bf16.msra.mxu0 %v1013_v8  ;;  %891 = vmatpush3.bf16.msra.mxu1 %v1014_v9  ;;  %v1025_v20 = vld [vmem:[#allocation2] sm:$0x78]   ;;  %v344_v22 = vrot.slane %v1022_v18, 2 }
  0x60   : > { %872 = vmatprep.subr.bf16.mxu0 %v1210_v0  ;;  %892 = vmatprep.subr.bf16.mxu1 %v1210_v0  ;;  %v461_v24 = vrot.slane %v1025_v20, 3  ;;  %v553_v32 = vld [vmem:[#allocation2 + $0x4] sm:$0xf] }
  0x63   : > { %873 = vmatpush3.bf16.msra.mxu0 %v1015_v10  ;;  %893 = vmatpush3.bf16.msra.mxu1 %v1016_v11 }
  0x64   : > { %874 = vmatprep.subr.bf16.mxu0 %v1210_v0  ;;  %894 = vmatprep.subr.bf16.mxu1 %v1210_v0 }
  0x67   : > { %875 = vmatpush3.bf16.msra.mxu0 %v1017_v14  ;;  %895 = vmatpush3.bf16.msra.mxu1 %v1018_v15 }
  0x68   : > { %876 = vmatprep.subr.bf16.mxu0 %v1210_v0  ;;  %896 = vmatprep.subr.bf16.mxu1 %v1210_v0 }
  0x6b   : > { %877 = vmatpush3.bf16.msra.mxu0 %v1019_v16  ;;  %897 = vmatpush3.bf16.msra.mxu1 %v1020_v17 }
  0x6c   : > { %878 = vmatprep.subr.bf16.mxu0 %v1210_v0  ;;  %898 = vmatprep.subr.bf16.mxu1 %v1210_v0 }
  0x6f   : > { %879 = vmatpush3.bf16.msra.mxu0 %v1021_v19  ;;  %899 = vmatpush3.bf16.msra.mxu1 %v1023_v21 }
  0x70   : > { %904 = vmatprep.subr.bf16.mxu0 %v1210_v0 }
  0x72   : > { %881 = vmatmul.mubr.bf16.vlgmr.msra.gmra.mxu0 %v344_v22  ;;  %901 = vmatmul.mubr.bf16.vlgmr.msra.gmra.mxu1 %v461_v24 }
  0x73   : > { %905 = vmatpush3.bf16.msra.mxu0 %v1024_v23  ;;  %920 = vmatprep.mubr.msk.bf16.mxu0 %vm1212_vm0, %v1210_v0 }
  0x74   : > { %906 = vmatprep.subr.bf16.mxu0 %v1210_v0 }
  0x77   : > { %907 = vmatpush3.bf16.msra.mxu0 %v1026_v25 }
  0x78   : > { %908 = vmatprep.subr.bf16.mxu0 %v1210_v0 }
  0x7b   : > { %909 = vmatpush3.bf16.msra.mxu0 %v1027_v26 }
  0x7c   : > { %910 = vmatprep.subr.bf16.mxu0 %v1210_v0 }
  0x7f   : > { %911 = vmatpush3.bf16.msra.mxu0 %v1028_v27 }
  0x80   : > { %912 = vmatprep.subr.bf16.mxu0 %v1210_v0 }
  0x83   : > { %913 = vmatpush3.bf16.msra.mxu0 %v1029_v28 }
  0x84   : > { %914 = vmatprep.subr.bf16.mxu0 %v1210_v0 }
  0x87   : > { %915 = vmatpush3.bf16.msra.mxu0 %v1030_v29 }
  0x88   : > { %916 = vmatprep.subr.bf16.mxu0 %v1210_v0 }
  0x8b   : > { %917 = vmatpush3.bf16.msra.mxu0 %v1031_v30 }
  0x8c   : > { %918 = vmatprep.subr.bf16.mxu0 %v1210_v0 }
  0x8f   : > { %919 = vmatpush3.bf16.msra.mxu0 %v1032_v31 }
  0x92   : > { %921 = vmatmul.mubr.bf16.vlgmr.msra.gmra.mxu0 %v553_v32 }
 0x132   : > { %v428_v33 = vpop.f32.mrf.mxu0  ;;  %v545_v34 = vpop.f32.mrf.mxu1 }
 0x133   : > { %v434_v42 = vadd.f32 %v806_v41, %v428_v33 }
 0x134   : > { %v882_v35 = vpop.f32.mrf.mxu0  ;;  %v902_v36 = vpop.f32.mrf.mxu1 }
 0x135   : > { %v551_v43 = vadd.f32 %v545_v34, %v434_v42 }
 0x136   : > { %v431_v37 = vpop.f32.mrf.mxu0  ;;  %v548_v38 = vpop.f32.mrf.mxu1 }
 0x138   : > { %v883_v39 = vpop.f32.mrf.mxu0  ;;  %v903_v40 = vpop.f32.mrf.mxu1 }
 0x152   : > { %v654_v44 = vpop.f32.mrf.mxu0 }
 0x153   : > { %v660_v45 = vadd.f32 %v654_v44, %v551_v43 }
 0x154   : > { %v922_v46 = vpop.f32.mrf.mxu0 }
 0x155   : > { %663 = vst [vmem:[%s292_s12] sm:$0xff] %v660_v45 }
 0x156   : > { %v657_v47 = vpop.f32.mrf.mxu0 }
 0x157   : > { %1128 = shalt.err (!%p1125_p3)
}
 0x158   : > { %s1129_s14 = scalar_lea.hbm %s1426_s26, 128  ;;  %s1133_s6 = scalar_lea.hbm %s1478_s4, 256 }
 0x159   : > { %p1130_p2 = scmp.ne.s32.totalorder %s1426_s26, %s1129_s14  ;;  %p1134_p12 = scmp.lt.s32.totalorder %s1426_s26, %s1478_s4 }
 0x15a   : > { %p1135_p13 = scmp.lt.s32.totalorder %s1133_s6, %s1129_s14 }
 0x15b   : > { %p1131_p6 = pnand %p1130_p2, %p1322_p0 }
 0x15c   : > { %p1136_p11 = por %p1135_p13, %p1134_p12 }
 0x15d   : > { %p1132_p9 = pneg %p1131_p6 }
 0x15f   : > { %p1137_p1 = pnand %p1136_p11, %p1132_p9 }
 0x161   : > { %1140 = shalt.err (!%p1137_p1)
}
 0x162   : > { %932 = dma.vmem_to_hbm [thread:$0]  (%p1322_p0), %s1428_s5, 128, %s1426_s26, %s665_s18   ;;  %v923_v48 = vpop.f32.mrf.mxu0 }
 0x163 PF: > { %s691_s21 = sand.u32 1, %s1183_s15   ;;  %p1491_p4 = scmp.ne.s32.totalorder %s1482_s24, 0 }
 0x164   : > { %p1492_p8 = scmp.ge.s32.totalorder %s1203_s20, 2  ;;  %s692_s23 = scalar_lea.sflag [#allocation6], %s691_s21 }
 0x166   : > { %p946_p10 = pnand %p1492_p8, %p1491_p4 }
 0x168   : > { %p947_p5 = pneg %p946_p10 }
 0x16a   : > { %1178 = dma.done.wait (%p947_p5), %s692_s23, 128  }
 0x16b   : > { %1180 = vsyncadd (%p947_p5), %s692_s23, 4294967168  ;;  %s23_s20 = sadd.s32 1, %s1203_s20   ;;  %s1493_s11 = sld [smem:[#allocation15_spill]] }
 0x16c   : > { %p20_p7 = scmp.ge.s32.totalorder %s23_s20, 4   ;;  %s1494_s15 = smov %s1187_s16 }
 0x16d   : > { %s1495_s16 = smov %s1191_s17  ;;  %s1496_s17 = smov %s1331_s22 }
 0x16e   : > { %s1497_s18 = smov %s1199_s19  ;;  %22 = sbr.rel (!%p20_p7) target bundleno = 10 (0xa), region = 108 }
 0x171   : > { %s1498_s19 = smov %s1493_s11 }
 0x173   :  { %697 = vsyncpa [#allocation5], 1 }
 0x174   :  { %699 = vsyncpa [#allocation5 + $0x1], 1 }
 0x175   :  { %700 = vsyncpa [#allocation8], 1 }
 0x176   :  { %702 = vsyncpa [#allocation8 + $0x1], 1 }
 0x177   :  { %703 = vsyncpa [#allocation6], 1 }
 0x178   :  { %705 = vsyncpa [#allocation6 + $0x1], 1 }

</bundles_post_ra>
